<compile_context>
chip_gen: v5e
topology: v5e:2x2
jax: 0.10.0
libtpu: 0.0.40
codegen_flags: <defaults>
</compile_context>

<pallas_src>
import functools

import jax
import jax.numpy as jnp
from jax import lax
from jax.experimental import pallas as pl
from jax.experimental.pallas import tpu as pltpu


def _contrastive_loss_kernel(emb_i_ref, emb_j_ref, out_ref, *, batch_size,
                             temperature):
    B = batch_size
    eps = 1e-12  # matches F.normalize default eps
    inv_t = 1.0 / temperature

    x_i = emb_i_ref[...].astype(jnp.float32)
    x_j = emb_j_ref[...].astype(jnp.float32)

    def normalize(x):
        # F.normalize(x, dim=1): x / max(||x||, eps) == x * rsqrt(max(sumsq, eps^2))
        sumsq = jnp.sum(x * x, axis=1, keepdims=True)
        return x * lax.rsqrt(jnp.maximum(sumsq, eps * eps))

    z_i = normalize(x_i)   # (B, D)
    z_j = normalize(x_j)   # (B, D)

    # Positives and self-similarity diagonals: O(B*D) elementwise VPU work.
    pos = jnp.sum(z_i * z_j, axis=1, keepdims=True)   # (B, 1) == diag(z_i @ z_j^T)
    d_i = jnp.sum(z_i * z_i, axis=1, keepdims=True)   # (B, 1) ~= 1 (computed diag)
    d_j = jnp.sum(z_j * z_j, axis=1, keepdims=True)   # (B, 1)

    # Blockwise cosine-similarity via NT contraction (no explicit .T, no concat).
    nt = (((1,), (1,)), ((), ()))
    sim_ii = lax.dot_general(z_i, z_i, nt, preferred_element_type=jnp.float32)
    sim_ij = lax.dot_general(z_i, z_j, nt, preferred_element_type=jnp.float32)
    sim_jj = lax.dot_general(z_j, z_j, nt, preferred_element_type=jnp.float32)

    # Exponent shift by 1/t (sim <= 1):  log(sum exp(s/t)) = 1/t + log(sum exp((s-1)/t))
    e_ii = jnp.exp((sim_ii - 1.0) * inv_t)
    e_ij = jnp.exp((sim_ij - 1.0) * inv_t)
    e_jj = jnp.exp((sim_jj - 1.0) * inv_t)
    e_ji = e_ij.T  # reuse cross block (XLU transpose) instead of recomputing exp/matmul

    # Per-row denominators (negatives only): full row sum minus the self term.
    denom_i = (jnp.sum(e_ii, axis=1, keepdims=True)
               + jnp.sum(e_ij, axis=1, keepdims=True)
               - jnp.exp((d_i - 1.0) * inv_t))          # rows 0..B-1
    denom_j = (jnp.sum(e_jj, axis=1, keepdims=True)
               + jnp.sum(e_ji, axis=1, keepdims=True)
               - jnp.exp((d_j - 1.0) * inv_t))          # rows B..2B-1

    # loss_row = log(denom) - pos/t, with the 1/t shift folded back in.
    loss_i = (1.0 - pos) * inv_t + jnp.log(denom_i)
    loss_j = (1.0 - pos) * inv_t + jnp.log(denom_j)

    out_ref[0, 0] = (jnp.sum(loss_i) + jnp.sum(loss_j)) / (2.0 * B)


def contrastive_loss(emb_i, emb_j, temperature=0.5):
    """Pallas implementation of ContrastiveLoss.forward. Returns a scalar."""
    assert emb_i.shape == emb_j.shape and emb_i.ndim == 2
    B, _ = emb_i.shape
    kernel = functools.partial(_contrastive_loss_kernel, batch_size=B,
                               temperature=float(temperature))
    out = pl.pallas_call(
        kernel,
        out_shape=jax.ShapeDtypeStruct((1, 1), jnp.float32),
        in_specs=[
            pl.BlockSpec(memory_space=pltpu.MemorySpace.VMEM),
            pl.BlockSpec(memory_space=pltpu.MemorySpace.VMEM),
        ],
        out_specs=pl.BlockSpec(memory_space=pltpu.MemorySpace.SMEM),
    )(emb_i, emb_j)
    return out[0, 0]


def _reference_loss(emb_i, emb_j, temperature=0.5):
    """Pure-JAX reference mirroring the PyTorch module."""
    B = emb_i.shape[0]
    eps = 1e-12

    def normalize(x):
        n = jnp.sqrt(jnp.sum(x * x, axis=1, keepdims=True))
        return x / jnp.maximum(n, eps)

    reps = jnp.concatenate([normalize(emb_i), normalize(emb_j)], axis=0)
    sim = reps @ reps.T
    sim_ij = jnp.diagonal(sim, offset=B)
    sim_ji = jnp.diagonal(sim, offset=-B)
    positives = jnp.concatenate([sim_ij, sim_ji], axis=0)
    neg_mask = 1.0 - jnp.eye(2 * B)
    nominator = jnp.exp(positives / temperature)
    denominator = jnp.sum(neg_mask * jnp.exp(sim / temperature), axis=1)
    loss_partial = -jnp.log(nominator / denominator)
    return jnp.sum(loss_partial) / (2.0 * B)


if __name__ == "__main__":
    batch_size = 8
    hidden = 32
    temperature = 0.5

    key = jax.random.PRNGKey(0)
    k1, k2 = jax.random.split(key)
    emb_i = jax.random.normal(k1, (batch_size, hidden), dtype=jnp.float32)
    emb_j = jax.random.normal(k2, (batch_size, hidden), dtype=jnp.float32)

    loss = contrastive_loss(emb_i, emb_j, temperature)
    loss = jax.block_until_ready(loss)

    ref = _reference_loss(emb_i, emb_j, temperature)
    assert jnp.allclose(loss, ref, rtol=1e-5, atol=1e-5), (loss, ref)

    print("KERNEL_OK")
</pallas_src>

<mosaic_0001>
module attributes {stable_mosaic.version = 11 : i64} {
  func.func @_contrastive_loss_kernel(%arg0: memref<8x32xf32, #tpu.memory_space<vmem>>, %arg1: memref<8x32xf32, #tpu.memory_space<vmem>>, %arg2: memref<1x1xf32, #tpu.memory_space<smem>>) attributes {dimension_semantics = [], scalar_prefetch = 0 : i64, scratch_operands = 0 : i64, tpu.core_type = #tpu.core_type<tc>} {
    %c0 = arith.constant 0 : index
    %c0_0 = arith.constant 0 : index
    %0 = vector.load %arg0[%c0, %c0_0] : memref<8x32xf32, #tpu.memory_space<vmem>>, vector<8x32xf32>
    %c0_1 = arith.constant 0 : index
    %c0_2 = arith.constant 0 : index
    %1 = vector.load %arg1[%c0_1, %c0_2] : memref<8x32xf32, #tpu.memory_space<vmem>>, vector<8x32xf32>
    %2 = arith.mulf %0, %0 : vector<8x32xf32>
    %cst = arith.constant dense<0.000000e+00> : vector<8xf32>
    %3 = vector.multi_reduction <add>, %2, %cst [1] : vector<8x32xf32> to vector<8xf32>
    %4 = vector.shape_cast %3 : vector<8xf32> to vector<8x1xf32>
    %cst_3 = arith.constant 1.000000e-24 : f32
    %5 = vector.broadcast %cst_3 : f32 to vector<8x1xf32>
    %6 = arith.maximumf %4, %5 : vector<8x1xf32>
    %7 = math.rsqrt %6 : vector<8x1xf32>
    %8 = vector.broadcast %7 : vector<8x1xf32> to vector<8x32xf32>
    %9 = arith.mulf %0, %8 : vector<8x32xf32>
    %10 = arith.mulf %1, %1 : vector<8x32xf32>
    %cst_4 = arith.constant dense<0.000000e+00> : vector<8xf32>
    %11 = vector.multi_reduction <add>, %10, %cst_4 [1] : vector<8x32xf32> to vector<8xf32>
    %12 = vector.shape_cast %11 : vector<8xf32> to vector<8x1xf32>
    %cst_5 = arith.constant 1.000000e-24 : f32
    %13 = vector.broadcast %cst_5 : f32 to vector<8x1xf32>
    %14 = arith.maximumf %12, %13 : vector<8x1xf32>
    %15 = math.rsqrt %14 : vector<8x1xf32>
    %16 = vector.broadcast %15 : vector<8x1xf32> to vector<8x32xf32>
    %17 = arith.mulf %1, %16 : vector<8x32xf32>
    %18 = arith.mulf %9, %17 : vector<8x32xf32>
    %cst_6 = arith.constant dense<0.000000e+00> : vector<8xf32>
    %19 = vector.multi_reduction <add>, %18, %cst_6 [1] : vector<8x32xf32> to vector<8xf32>
    %20 = vector.shape_cast %19 : vector<8xf32> to vector<8x1xf32>
    %21 = arith.mulf %9, %9 : vector<8x32xf32>
    %cst_7 = arith.constant dense<0.000000e+00> : vector<8xf32>
    %22 = vector.multi_reduction <add>, %21, %cst_7 [1] : vector<8x32xf32> to vector<8xf32>
    %23 = vector.shape_cast %22 : vector<8xf32> to vector<8x1xf32>
    %24 = arith.mulf %17, %17 : vector<8x32xf32>
    %cst_8 = arith.constant dense<0.000000e+00> : vector<8xf32>
    %25 = vector.multi_reduction <add>, %24, %cst_8 [1] : vector<8x32xf32> to vector<8xf32>
    %26 = vector.shape_cast %25 : vector<8xf32> to vector<8x1xf32>
    %cst_9 = arith.constant dense<0.000000e+00> : vector<8x8xf32>
    %27 = tpu.matmul %9, %9, %cst_9 {dimension_numbers = #tpu.dot_dimension_numbers<[1], [1], [0], [0], [0, 0, 1, 0], [], []>} : vector<8x32xf32>, vector<8x32xf32>, vector<8x8xf32> -> vector<8x8xf32>
    %cst_10 = arith.constant dense<0.000000e+00> : vector<8x8xf32>
    %28 = tpu.matmul %9, %17, %cst_10 {dimension_numbers = #tpu.dot_dimension_numbers<[1], [1], [0], [0], [0, 0, 1, 0], [], []>} : vector<8x32xf32>, vector<8x32xf32>, vector<8x8xf32> -> vector<8x8xf32>
    %cst_11 = arith.constant dense<0.000000e+00> : vector<8x8xf32>
    %29 = tpu.matmul %17, %17, %cst_11 {dimension_numbers = #tpu.dot_dimension_numbers<[1], [1], [0], [0], [0, 0, 1, 0], [], []>} : vector<8x32xf32>, vector<8x32xf32>, vector<8x8xf32> -> vector<8x8xf32>
    %cst_12 = arith.constant 1.000000e+00 : f32
    %30 = vector.broadcast %cst_12 : f32 to vector<8x8xf32>
    %31 = arith.subf %27, %30 : vector<8x8xf32>
    %cst_13 = arith.constant 2.000000e+00 : f32
    %32 = vector.broadcast %cst_13 : f32 to vector<8x8xf32>
    %33 = arith.mulf %31, %32 : vector<8x8xf32>
    %34 = math.exp %33 : vector<8x8xf32>
    %cst_14 = arith.constant 1.000000e+00 : f32
    %35 = vector.broadcast %cst_14 : f32 to vector<8x8xf32>
    %36 = arith.subf %28, %35 : vector<8x8xf32>
    %cst_15 = arith.constant 2.000000e+00 : f32
    %37 = vector.broadcast %cst_15 : f32 to vector<8x8xf32>
    %38 = arith.mulf %36, %37 : vector<8x8xf32>
    %39 = math.exp %38 : vector<8x8xf32>
    %cst_16 = arith.constant 1.000000e+00 : f32
    %40 = vector.broadcast %cst_16 : f32 to vector<8x8xf32>
    %41 = arith.subf %29, %40 : vector<8x8xf32>
    %cst_17 = arith.constant 2.000000e+00 : f32
    %42 = vector.broadcast %cst_17 : f32 to vector<8x8xf32>
    %43 = arith.mulf %41, %42 : vector<8x8xf32>
    %44 = math.exp %43 : vector<8x8xf32>
    %45 = tpu.transpose %39, [1, 0] : vector<8x8xf32> -> vector<8x8xf32>
    %cst_18 = arith.constant dense<0.000000e+00> : vector<8xf32>
    %46 = vector.multi_reduction <add>, %34, %cst_18 [1] : vector<8x8xf32> to vector<8xf32>
    %47 = vector.shape_cast %46 : vector<8xf32> to vector<8x1xf32>
    %cst_19 = arith.constant dense<0.000000e+00> : vector<8xf32>
    %48 = vector.multi_reduction <add>, %39, %cst_19 [1] : vector<8x8xf32> to vector<8xf32>
    %49 = vector.shape_cast %48 : vector<8xf32> to vector<8x1xf32>
    %50 = arith.addf %47, %49 : vector<8x1xf32>
    %cst_20 = arith.constant 1.000000e+00 : f32
    %51 = vector.broadcast %cst_20 : f32 to vector<8x1xf32>
    %52 = arith.subf %23, %51 : vector<8x1xf32>
    %cst_21 = arith.constant 2.000000e+00 : f32
    %53 = vector.broadcast %cst_21 : f32 to vector<8x1xf32>
    %54 = arith.mulf %52, %53 : vector<8x1xf32>
    %55 = math.exp %54 : vector<8x1xf32>
    %56 = arith.subf %50, %55 : vector<8x1xf32>
    %cst_22 = arith.constant dense<0.000000e+00> : vector<8xf32>
    %57 = vector.multi_reduction <add>, %44, %cst_22 [1] : vector<8x8xf32> to vector<8xf32>
    %58 = vector.shape_cast %57 : vector<8xf32> to vector<8x1xf32>
    %cst_23 = arith.constant dense<0.000000e+00> : vector<8xf32>
    %59 = vector.multi_reduction <add>, %45, %cst_23 [1] : vector<8x8xf32> to vector<8xf32>
    %60 = vector.shape_cast %59 : vector<8xf32> to vector<8x1xf32>
    %61 = arith.addf %58, %60 : vector<8x1xf32>
    %cst_24 = arith.constant 1.000000e+00 : f32
    %62 = vector.broadcast %cst_24 : f32 to vector<8x1xf32>
    %63 = arith.subf %26, %62 : vector<8x1xf32>
    %cst_25 = arith.constant 2.000000e+00 : f32
    %64 = vector.broadcast %cst_25 : f32 to vector<8x1xf32>
    %65 = arith.mulf %63, %64 : vector<8x1xf32>
    %66 = math.exp %65 : vector<8x1xf32>
    %67 = arith.subf %61, %66 : vector<8x1xf32>
    %cst_26 = arith.constant 1.000000e+00 : f32
    %68 = vector.broadcast %cst_26 : f32 to vector<8x1xf32>
    %69 = arith.subf %68, %20 : vector<8x1xf32>
    %cst_27 = arith.constant 2.000000e+00 : f32
    %70 = vector.broadcast %cst_27 : f32 to vector<8x1xf32>
    %71 = arith.mulf %69, %70 : vector<8x1xf32>
    %72 = math.log %56 : vector<8x1xf32>
    %73 = arith.addf %71, %72 : vector<8x1xf32>
    %cst_28 = arith.constant 1.000000e+00 : f32
    %74 = vector.broadcast %cst_28 : f32 to vector<8x1xf32>
    %75 = arith.subf %74, %20 : vector<8x1xf32>
    %cst_29 = arith.constant 2.000000e+00 : f32
    %76 = vector.broadcast %cst_29 : f32 to vector<8x1xf32>
    %77 = arith.mulf %75, %76 : vector<8x1xf32>
    %78 = math.log %67 : vector<8x1xf32>
    %79 = arith.addf %77, %78 : vector<8x1xf32>
    %80 = vector.shape_cast %73 : vector<8x1xf32> to vector<1x8x1xf32>
    %cst_30 = arith.constant dense<0.000000e+00> : vector<1xf32>
    %81 = vector.multi_reduction <add>, %80, %cst_30 [1, 2] : vector<1x8x1xf32> to vector<1xf32>
    %82 = vector.shape_cast %81 : vector<1xf32> to vector<1x1x1xf32>
    %83 = vector.extract %82[0, 0, 0] : f32 from vector<1x1x1xf32>
    %84 = vector.shape_cast %79 : vector<8x1xf32> to vector<1x8x1xf32>
    %cst_31 = arith.constant dense<0.000000e+00> : vector<1xf32>
    %85 = vector.multi_reduction <add>, %84, %cst_31 [1, 2] : vector<1x8x1xf32> to vector<1xf32>
    %86 = vector.shape_cast %85 : vector<1xf32> to vector<1x1x1xf32>
    %87 = vector.extract %86[0, 0, 0] : f32 from vector<1x1x1xf32>
    %88 = arith.addf %83, %87 : f32
    %cst_32 = arith.constant 1.600000e+01 : f32
    %89 = arith.divf %88, %cst_32 : f32
    %c0_33 = arith.constant 0 : index
    %c0_34 = arith.constant 0 : index
    %90 = memref.load %arg2[%c0_33, %c0_34] : memref<1x1xf32, #tpu.memory_space<smem>>
    memref.store %89, %arg2[%c0_33, %c0_34] : memref<1x1xf32, #tpu.memory_space<smem>>
    return
  }
}

</mosaic_0001>

<bundles_post_ra>
// kernel: tpu_custom_call.1
= control target key start
LH: loop header
LB: loop body
LE: loop exit
PB: predicated region body
PF: predicated region fallthrough
CT: control target
= control target key end

     0   :  { %7 = vsyncpa [#allocation3], 0  ;;  %s433_s0 = inlined_call_operand.hbm [shape: f32[8,32], index: 0, kind: input, shape index: {}]   ;;  %s434_s1 = inlined_call_operand.hbm [shape: f32[8,32], index: 1, kind: input, shape index: {}]   ;;  %s435_s2 = inlined_call_operand.hbm [shape: f32[1,1], index: 2, kind: output, shape index: {}]  }
   0x1   :  { %8 = vsyncpa [#allocation6], 0 }
   0x2   :  { %9 = vsyncpa [#allocation4], 0  ;;  %s15_s11 = sshll.u32 %s433_s0, 4  ;;  %s388_s12 = smov [#allocation2]   ;;  %s16_s11 = int_to_ptr.hbm [resolvable:$true] %s15_s11 }
   0x3   :  { %s17_s13 = sshll.u32 %s388_s12, 4  ;;  %s26_s16 = sshll.u32 %s434_s1, 4  ;;  %s18_s13 = int_to_ptr.vmem [resolvable:$true] %s17_s13  ;;  %s27_s16 = int_to_ptr.hbm [resolvable:$true] %s26_s16 }
   0x4   :  { %20 = dma.hbm_to_vmem [thread:$0]  %s16_s11, 128, %s18_s13, [#allocation3]  }
   0x5   :  { %s389_s17 = smov [#allocation5]  }
   0x6   :  { %s28_s18 = sshll.u32 %s389_s17, 4  ;;  %s29_s18 = int_to_ptr.vmem [resolvable:$true] %s28_s18 }
   0x7   :  { %31 = dma.hbm_to_vmem [thread:$0]  %s27_s16, 128, %s29_s18, [#allocation6]  }
   0x8   :  { %382 = dma.done.wait [#allocation3], 128  }
   0x9   :  { %383 = vsyncadd [#allocation3], 4294967168 }
   0xa   :  { %384 = dma.done.wait [#allocation6], 128  }
   0xb   :  { %385 = vsyncadd [#allocation6], 4294967168  ;;  %v41_v0 = vld [vmem:[#allocation5] sm:$0xff]  ;;  %vm43_vm0 = vcmask 261120   ;;  %v40_v2 = vld [vmem:[#allocation2] sm:$0xff]  ;;  %vm197_vm7 = vcmask 64512  }
   0xc   :  { %v59_v1 = vmul.f32 %v41_v0, %v41_v0  ;;  %v42_v4 = vmul.f32 %v40_v2, %v40_v2  ;;  %vm230_vm8 = vcmask 7168   ;;  %s268_s20 = sshll.u32 %s435_s2, 4  ;;  %s391_s25 = smov [#allocation7]   ;;  %s269_s20 = int_to_ptr.hbm [resolvable:$true] %s268_s20 }
   0xe   :  { %v60_v3 = vsel %vm43_vm0, %v59_v1, 0.0  ;;  %v44_v5 = vsel %vm43_vm0, %v42_v4, 0.0 }
   0xf   :  { %61 = vadd.xlane.f32.xlu0 %v60_v3 }
  0x17   :  { %45 = vadd.xlane.f32.xlu0 %v44_v5 }
  0x82   :  { %v62_v6 = vpop.xlane.xlu0 %61 }
  0x83   :  { %v63_v7 = vmax.f32 %v62_v6, 1e-24 }
  0x85   :  { %302 = vrsqrt.f32 %v63_v7  ;;  %vm70_vm2 = vweird.f32 %v63_v7 }
  0x8a   :  { %v46_v8 = vpop.xlane.xlu0 %45 }
  0x8b   :  { %v303_v9 = vpop.eup %302  ;;  %v47_v10 = vmax.f32 %v46_v8, 1e-24 }
  0x8c   :  { %v65_v11 = vmul.f32 %v303_v9, %v63_v7  ;;  %vm71_vm1 = vweird.f32 %v303_v9 }
  0x8d   :  { %304 = vrsqrt.f32 %v47_v10  ;;  %vm72_vm3 = vmor %vm70_vm2, %vm71_vm1  ;;  %vm54_vm5 = vweird.f32 %v47_v10 }
  0x8e   :  { %v66_v12 = vmul.f32 %v303_v9, %v65_v11 }
  0x90   :  { %v67_v13 = vmul.f32 0.5, %v66_v12 }
  0x92   :  { %v68_v14 = vsub.f32 1.5, %v67_v13 }
  0x93   :  { %v305_v15 = vpop.eup %304 }
  0x94   :  { %v69_v16 = vmul.f32 %v303_v9, %v68_v14  ;;  %v49_v17 = vmul.f32 %v305_v15, %v47_v10  ;;  %vm55_vm4 = vweird.f32 %v305_v15 }
  0x95   :  { %vm56_vm6 = vmor %vm54_vm5, %vm55_vm4 }
  0x96   :  { %v73_v18 = vsel %vm72_vm3, %v303_v9, %v69_v16  ;;  %v50_v19 = vmul.f32 %v305_v15, %v49_v17 }
  0x97   :  { %v74_v20 = vmul.f32 %v73_v18, %v41_v0 }
  0x98   :  { %v51_v21 = vmul.f32 0.5, %v50_v19 }
  0x99   :  { %282 = vmatpush.xpose.msk.msra.mxu1 %vm43_vm0, %v74_v20  ;;  %284 = vmatpush.xpose.msk.msra.mxu2 %vm43_vm0, %v74_v20  ;;  %v83_v22 = vmul.f32 %v74_v20, %v74_v20 }
  0x9a   :  { %v52_v23 = vsub.f32 1.5, %v51_v21 }
  0x9b   :  { %v84_v24 = vsel %vm43_vm0, %v83_v22, 0.0 }
  0x9c   :  { %v53_v25 = vmul.f32 %v305_v15, %v52_v23  ;;  %285 = vmatmul.msk.f32.vlgmr.msra.gmra.mxu2 %vm43_vm0, %v74_v20  ;;  %85 = vadd.xlane.f32.xlu2 %v84_v24  ;;  %v390_v24 = vmov 16.0  }
  0x9e   :  { %v57_v26 = vsel %vm56_vm6, %v305_v15, %v53_v25 }
  0x9f   :  { %v58_v27 = vmul.f32 %v57_v26, %v40_v2 }
  0xa1   :  { %280 = vmatpush.xpose.msk.msra.mxu0 %vm43_vm0, %v58_v27  ;;  %283 = vmatmul.msk.f32.vlgmr.msra.gmra.mxu1 %vm43_vm0, %v58_v27  ;;  %v75_v28 = vmul.f32 %v74_v20, %v58_v27  ;;  %v79_v48 = vmul.f32 %v58_v27, %v58_v27 }
  0xa3   :  { %v76_v47 = vsel %vm43_vm0, %v75_v28, 0.0  ;;  %v80_v49 = vsel %vm43_vm0, %v79_v48, 0.0 }
  0xa4   :  { %281 = vmatmul.msk.f32.vlgmr.msra.gmra.mxu0 %vm43_vm0, %v58_v27 }
 0x10f   :  { %v86_v52 = vpop.xlane.xlu2 %85 }
 0x110   :  { %v290_v6 = vadd.f32 -1.0, %v86_v52 }
 0x112   :  { %v218_v7 = vmul.f32 2.0, %v290_v6 }
 0x114   :  { %v219_v8 = vmul.f32 1.442695, %v218_v7 }
 0x11e   :  { %v130_v29 = vpop.f32.mrf.mxu1 }
 0x11f   :  { %v287_v30 = vadd.f32 -1.0, %v130_v29  ;;  %v150_v31 = vpop.f32.mrf.mxu2 }
 0x120   :  { %v288_v34 = vadd.f32 -1.0, %v150_v31 }
 0x121   :  { %v158_v32 = vmul.f32 2.0, %v287_v30  ;;  %v107_v33 = vpop.f32.mrf.mxu0 }
 0x122   :  { %v286_v35 = vadd.f32 -1.0, %v107_v33  ;;  %v162_v38 = vmul.f32 2.0, %v288_v34 }
 0x123   :  { %v159_v36 = vmul.f32 1.442695, %v158_v32 }
 0x124   :  { %v154_v37 = vmul.f32 2.0, %v286_v35  ;;  %v163_v40 = vmul.f32 1.442695, %v162_v38 }
 0x125   :  { %306 = vpow2.f32 %v159_v36 }
 0x126   :  { %v155_v39 = vmul.f32 1.442695, %v154_v37 }
 0x128   :  { %308 = vpow2.f32 %v155_v39 }
 0x129   :  { %310 = vpow2.f32 %v163_v40 }
 0x12b   :  { %v307_v41 = vpop.eup %306 }
 0x12c   :  { %165 = vxpose.xlu1.b32.start.end [1/1] (short) (narrow) %v307_v41, 8  ;;  %v201_v42 = vsel %vm197_vm7, %v307_v41, 0.0 }
 0x12d   :  { %202 = vadd.xlane.f32.xlu0 %v201_v42 }
 0x12e   :  { %v309_v43 = vpop.eup %308 }
 0x12f   :  { %v198_v44 = vsel %vm197_vm7, %v309_v43, 0.0  ;;  %v311_v45 = vpop.eup %310 }
 0x130   :  { %199 = vadd.xlane.f32.xlu2 %v198_v44  ;;  %v210_v46 = vsel %vm197_vm7, %v311_v45, 0.0 }
 0x138   :  { %211 = vadd.xlane.f32.xlu2 %v210_v46 }
 0x140   :  { %77 = vadd.xlane.f32.xlu2 %v76_v47 }
 0x18c   :  { %81 = vadd.xlane.f32.xlu1 %v80_v49 }
 0x1a0   :  { %v203_v59 = vpop.xlane.xlu0 %202 }
 0x1a3   :  { %v200_v53 = vpop.xlane.xlu2 %199 }
 0x1a4   :  { %v204_v60 = vadd.f32 %v203_v59, %v200_v53 }
 0x1ab   :  { %v212_v58 = vpop.xlane.xlu2 %211 }
 0x1b3   :  { %v78_v63 = vpop.xlane.xlu2 %77 }
 0x1b4   :  { %v222_v0 = vsub.f32 1.0, %v78_v63 }
 0x1b6   :  { %v223_v2 = vmul.f32 2.0, %v222_v0 }
 0x1d0   :  { %v181_v50 = vpop.trf.xlu1 }
 0x1d1   :  { %v213_v51 = vsel %vm197_vm7, %v181_v50, 0.0 }
 0x1d2   :  { %214 = vadd.xlane.f32.xlu0 %v213_v51 }
 0x1ff   :  { %v82_v54 = vpop.xlane.xlu1 %81 }
 0x200   :  { %v289_v55 = vadd.f32 -1.0, %v82_v54 }
 0x202   :  { %v206_v56 = vmul.f32 2.0, %v289_v55 }
 0x204   :  { %v207_v57 = vmul.f32 1.442695, %v206_v56 }
 0x206   :  { %312 = vpow2.f32 %v207_v57 }
 0x20c   :  { %v313_v61 = vpop.eup %312 }
 0x20d   :  { %v209_v62 = vsub.f32 %v204_v60, %v313_v61 }
 0x20f   :  { %314 = vlog2.f32 %v209_v62 }
 0x210   :  { %316 = vpow2.f32 %v219_v8 }
 0x215   :  { %v315_v1 = vpop.eup %314 }
 0x216   :  { %v225_v3 = vmul.f32 0.6931472, %v315_v1  ;;  %v317_v11 = vpop.eup %316 }
 0x218   :  { %v226_v4 = vadd.f32 %v225_v3, %v223_v2 }
 0x21a   :  { %v231_v5 = vsel %vm230_vm8, %v226_v4, 0.0 }
 0x21b   :  { %232 = vadd.xlane.f32.xlu0 %v231_v5 }
 0x245   :  { %v215_v9 = vpop.xlane.xlu0 %214 }
 0x246   :  { %v216_v10 = vadd.f32 %v215_v9, %v212_v58 }
 0x248   :  { %v221_v12 = vsub.f32 %v216_v10, %v317_v11 }
 0x24a   :  { %318 = vlog2.f32 %v221_v12 }
 0x24b   :  { %320 = vrcp.f32 %v390_v24 }
 0x250   :  { %v319_v13 = vpop.eup %318 }
 0x251   :  { %v228_v14 = vmul.f32 0.6931472, %v319_v13  ;;  %v321_v25 = vpop.eup %320 }
 0x252   :  { %v253_v26 = vmul.f32 16.0, %v321_v25  ;;  %vm257_vm9 = vweird.f32 %v321_v25 }
 0x253   :  { %v229_v15 = vadd.f32 %v228_v14, %v223_v2 }
 0x254   :  { %v254_v27 = vsub.f32 1.0, %v253_v26 }
 0x255   :  { %v241_v16 = vsel %vm230_vm8, %v229_v15, 0.0 }
 0x256   :  { %242 = vadd.xlane.f32.xlu2 %v241_v16  ;;  %v255_v31 = vmul.f32 %v321_v25, %v254_v27 }
 0x258   :  { %v256_v34 = vadd.f32 %v321_v25, %v255_v31 }
 0x25a   :  { %v258_v37 = vsel %vm257_vm9, %v321_v25, %v256_v34 }
 0x28e   :  { %v233_v17 = vpop.xlane.xlu0 %232 }
 0x28f   :  { %v234_v18 = vrot.slane %v233_v17, 4 }
 0x291   :  { %v235_v19 = vadd.f32 %v234_v18, %v233_v17 }
 0x293   :  { %v236_v20 = vrot.slane %v235_v19, 2 }
 0x295   :  { %v237_v21 = vadd.f32 %v236_v20, %v235_v19 }
 0x297   :  { %v238_v22 = vrot.slane %v237_v21, 1 }
 0x299   :  { %v239_v23 = vadd.f32 %v238_v22, %v237_v21 }
 0x29b   :  { %291 = vpush %v239_v23 }
 0x2c9   :  { %v243_v28 = vpop.xlane.xlu2 %242 }
 0x2ca   :  { %v244_v29 = vrot.slane %v243_v28, 4 }
 0x2cc   :  { %v245_v30 = vadd.f32 %v244_v29, %v243_v28  ;;  %s292_s0 = spop %291 }
 0x2ce   :  { %v246_v32 = vrot.slane %v245_v30, 2 }
 0x2d0   :  { %v247_v33 = vadd.f32 %v246_v32, %v245_v30 }
 0x2d2   :  { %v248_v35 = vrot.slane %v247_v33, 1 }
 0x2d4   :  { %v249_v36 = vadd.f32 %v248_v35, %v247_v33 }
 0x2d6   :  { %293 = vpush %v249_v36 }
 0x2d7   :  { %295 = vpush %v258_v37 }
 0x307   :  { %s294_s21 = spop %293 }
 0x308   :  { %s251_s22 = sadd.f32 %s294_s21, %s292_s0  ;;  %s296_s23 = spop %295 }
 0x30a   :  { %s260_s24 = smul.f32 %s296_s23, %s251_s22 }
 0x30c   :  { %262 = sst [smem:[#allocation7]] %s260_s24 }
 0x30d   :  { %271 = dma.smem_to_hbm %s391_s25, 16, %s269_s20, [#allocation4]  }
 0x30e   :  { %386 = dma.done.wait [#allocation4], 16  }
 0x30f   :  { %387 = vsyncadd [#allocation4], 4294967280 }
 0x310   :  { %276 = sfence }
 0x311   :  { %277 = vsyncpa [#allocation3], 1 }
 0x312   :  { %278 = vsyncpa [#allocation6], 1 }
 0x313   :  { %279 = vsyncpa [#allocation4], 1 }

</bundles_post_ra>
